<compile_context>
chip_gen: v7x
topology: tpu7x:2x2x1
jax: 0.10.0
libtpu: 0.0.40
codegen_flags: <defaults>
</compile_context>

<pallas_src>
import functools

import jax
import jax.numpy as jnp
from jax.experimental import pallas as pl
from jax.experimental.pallas import tpu as pltpu


def _cdiv(a, b):
    return -(-a // b)


def _contributing_taps(H, W, KH, KW, dilation, padding):
    """Taps whose shifted window intersects the valid input (static, Python)."""
    taps = []
    for kh in range(KH):
        for kw in range(KW):
            oh = kh * dilation - padding
            ow = kw * dilation - padding
            if -H < oh < H and -W < ow < W:
                taps.append((kh, kw, oh, ow))
    return taps


def _center_conv_kernel(w_ref, x_ref, o_ref):
    # w_ref: (Cout, Cin) bf16, constant block index -> DMA'd once, resident.
    # x_ref: (1, Cin, tn)  f32 block of X = (N, Cin, H*W); cast to bf16 here.
    # o_ref: (1, Cout, tn) f32 output tile (written directly, no scratch).
    o_ref[0] = jnp.dot(
        w_ref[...],
        x_ref[0].astype(jnp.bfloat16),
        preferred_element_type=jnp.float32,
    )


def _tap_conv_kernel(w_ref, x_ref, o_ref):
    # General multi-tap path (only reached when H or W > dilation).
    # w_ref: (1, Cout, Cin) bf16, current tap's weights.
    # x_ref: (1, 1, Cin, tn) bf16 block of the tap-shifted input slab.
    # o_ref: (1, Cout, tn) f32; block index constant across the tap axis, so it
    #        stays VMEM-resident and serves directly as the f32 accumulator.
    t = pl.program_id(2)
    contrib = jnp.dot(w_ref[0], x_ref[0, 0], preferred_element_type=jnp.float32)

    @pl.when(t == 0)
    def _():
        o_ref[0] = contrib

    @pl.when(t > 0)
    def _():
        o_ref[0] += contrib


@functools.partial(jax.jit, static_argnames=("dilation", "padding"))
def conv2d_dilated(x_nchw, weight_oihw, *, dilation=36, padding=36):
    """Equivalent of torch Conv2d(Cin, Cout, 3, stride=1, padding=36, dilation=36, bias=False)."""
    N, Cin, H, W = x_nchw.shape
    Cout, Cin_w, KH, KW = weight_oihw.shape
    assert Cin == Cin_w

    taps = _contributing_taps(H, W, KH, KW, dilation, padding)
    T = len(taps)
    HW = H * W

    if T == 0:  # every tap samples only zero padding
        return jnp.zeros((N, Cout, H, W), dtype=jnp.float32)

    # Lane tile over the flattened spatial dim (output's last / lane dim).
    if HW <= 512:
        tn = HW                                   # single full-extent block
    else:
        tn = min(512, 128 * _cdiv(_cdiv(HW, 128), 2))  # e.g. 784 -> 512 -> 2 blocks
    n_m = _cdiv(HW, tn)

    vmem_params = pltpu.CompilerParams(
        dimension_semantics=("parallel", "parallel"),
        vmem_limit_bytes=24 * 1024 * 1024,
    )

    kh0, kw0, oh0, ow0 = taps[0]
    if T == 1 and oh0 == 0 and ow0 == 0:
        # ---- hot path: center tap only (the real module's 28x28 regime) ----
        X = x_nchw.reshape(N, Cin, HW)                       # free reshape
        Wc = weight_oihw[:, :, kh0, kw0].astype(jnp.bfloat16)  # (Cout, Cin)

        cost = pl.CostEstimate(
            flops=2 * N * HW * Cin * Cout,
            transcendentals=0,
            bytes_accessed=N * HW * Cin * 4 + Cout * Cin * 2 + N * HW * Cout * 4,
        )
        out = pl.pallas_call(
            _center_conv_kernel,
            out_shape=jax.ShapeDtypeStruct((N, Cout, HW), jnp.float32),
            grid_spec=pltpu.PrefetchScalarGridSpec(
                num_scalar_prefetch=0,
                grid=(N, n_m),
                in_specs=[
                    pl.BlockSpec((Cout, Cin), lambda n, m: (0, 0)),
                    pl.BlockSpec((1, Cin, tn), lambda n, m: (n, 0, m)),
                ],
                out_specs=pl.BlockSpec((1, Cout, tn), lambda n, m: (n, 0, m)),
            ),
            compiler_params=vmem_params,
            cost_estimate=cost,
        )(Wc, X)
        return out.reshape(N, Cout, H, W)

    # ---- general multi-tap path (H or W > dilation; never hit by the module) ----
    # TODO(synk): this path still materializes T shifted copies of X; fold the tap
    # offset into the index_map / manual DMA if large-H/W inputs ever matter.
    ph = max(abs(oh) for _, _, oh, _ in taps)
    pw = max(abs(ow) for _, _, _, ow in taps)
    xpad = jnp.pad(x_nchw, ((0, 0), (0, 0), (ph, ph), (pw, pw)))
    slabs = [
        xpad[:, :, ph + oh: ph + oh + H, pw + ow: pw + ow + W]
        for _, _, oh, ow in taps
    ]
    Xt = jnp.stack(slabs, axis=0).reshape(T, N, Cin, HW).astype(jnp.bfloat16)
    Wt = jnp.stack(
        [weight_oihw[:, :, kh, kw] for kh, kw, _, _ in taps], axis=0
    ).astype(jnp.bfloat16)                                   # (T, Cout, Cin)

    out = pl.pallas_call(
        _tap_conv_kernel,
        out_shape=jax.ShapeDtypeStruct((N, Cout, HW), jnp.float32),
        grid_spec=pltpu.PrefetchScalarGridSpec(
            num_scalar_prefetch=0,
            grid=(N, n_m, T),                    # reduction (tap) axis last
            in_specs=[
                pl.BlockSpec((1, Cout, Cin), lambda n, m, t: (t, 0, 0)),
                pl.BlockSpec((1, 1, Cin, tn), lambda n, m, t: (t, n, 0, m)),
            ],
            out_specs=pl.BlockSpec((1, Cout, tn), lambda n, m, t: (n, 0, m)),
        ),
        compiler_params=pltpu.CompilerParams(
            dimension_semantics=("parallel", "parallel", "arbitrary"),
            vmem_limit_bytes=24 * 1024 * 1024,
        ),
    )(Wt, Xt)
    return out.reshape(N, Cout, H, W)


def _reference(x, w, dilation, padding):
    # XLA dilated conv with the same bf16 input rounding + f32 accumulation
    # as the kernel (bf16 cast is an intentional perf choice).
    return jax.lax.conv_general_dilated(
        x.astype(jnp.bfloat16).astype(jnp.float32),
        w.astype(jnp.bfloat16).astype(jnp.float32),
        window_strides=(1, 1),
        padding=((padding, padding), (padding, padding)),
        rhs_dilation=(dilation, dilation),
        dimension_numbers=("NCHW", "OIHW", "NCHW"),
    )


if __name__ == "__main__":
    key = jax.random.PRNGKey(0)
    k1, k2, k3, k4 = jax.random.split(key, 4)

    # Case 1: center-tap-only regime (same as the real 28x28 module), small shapes.
    N, Cin, H, W, Cout = 2, 64, 16, 16, 128
    x = jax.random.normal(k1, (N, Cin, H, W), dtype=jnp.float32)
    weight = jax.random.normal(k2, (Cout, Cin, 3, 3), dtype=jnp.float32) * 0.05
    y = jax.block_until_ready(conv2d_dilated(x, weight, dilation=36, padding=36))
    y_ref = _reference(x, weight, 36, 36)
    assert y.shape == (N, Cout, H, W)
    assert jnp.allclose(y, y_ref, atol=2e-2, rtol=2e-2), float(
        jnp.max(jnp.abs(y - y_ref))
    )

    # Case 2: multi-tap path (H > dilation) to validate the accumulation kernel.
    N2, Cin2, H2, W2, Cout2 = 1, 32, 40, 12, 64
    x2 = jax.random.normal(k3, (N2, Cin2, H2, W2), dtype=jnp.float32)
    w2 = jax.random.normal(k4, (Cout2, Cin2, 3, 3), dtype=jnp.float32) * 0.05
    y2 = jax.block_until_ready(conv2d_dilated(x2, w2, dilation=36, padding=36))
    y2_ref = _reference(x2, w2, 36, 36)
    assert y2.shape == (N2, Cout2, H2, W2)
    assert jnp.allclose(y2, y2_ref, atol=2e-2, rtol=2e-2), float(
        jnp.max(jnp.abs(y2 - y2_ref))
    )

    print("KERNEL_OK")
</pallas_src>

<mosaic_0001>
module attributes {stable_mosaic.version = 11 : i64} {
  func.func @_center_conv_kernel(%arg0: i32, %arg1: i32, %arg2: memref<128x64xbf16, #tpu.memory_space<vmem>>, %arg3: memref<1x64x256xf32, #tpu.memory_space<vmem>>, %arg4: memref<1x128x256xf32, #tpu.memory_space<vmem>>) attributes {dimension_semantics = [#tpu.dimension_semantics<parallel>, #tpu.dimension_semantics<parallel>], iteration_bounds = array<i64: 2, 1>, scalar_prefetch = 0 : i64, scratch_operands = 0 : i64, tpu.core_type = #tpu.core_type<tc>, window_params = [{pipeline_mode = #tpu.pipeline_mode<synchronous>, transform_indices = @transform_0, window_bounds = array<i64: 128, 64>}, {transform_indices = @transform_1, window_bounds = array<i64: 1, 64, 256>}, {transform_indices = @transform_2, window_bounds = array<i64: 1, 128, 256>}]} {
    %c0 = arith.constant 0 : index
    %c0_0 = arith.constant 0 : index
    %0 = vector.load %arg2[%c0, %c0_0] : memref<128x64xbf16, #tpu.memory_space<vmem>>, vector<128x64xbf16>
    %c0_1 = arith.constant 0 : index
    %c0_2 = arith.constant 0 : index
    %c0_3 = arith.constant 0 : index
    %1 = vector.load %arg3[%c0_1, %c0_2, %c0_3] : memref<1x64x256xf32, #tpu.memory_space<vmem>>, vector<1x64x256xf32>
    %2 = vector.shape_cast %1 : vector<1x64x256xf32> to vector<64x256xf32>
    %3 = arith.truncf %2 : vector<64x256xf32> to vector<64x256xbf16>
    %cst = arith.constant dense<0.000000e+00> : vector<128x256xf32>
    %4 = tpu.matmul %0, %3, %cst {dimension_numbers = #tpu.dot_dimension_numbers<[1], [0], [0], [1], [0, 0, 1, 1], [], []>} : vector<128x64xbf16>, vector<64x256xbf16>, vector<128x256xf32> -> vector<128x256xf32>
    %c0_4 = arith.constant 0 : index
    %c0_5 = arith.constant 0 : index
    %c0_6 = arith.constant 0 : index
    %5 = vector.load %arg4[%c0_4, %c0_5, %c0_6] : memref<1x128x256xf32, #tpu.memory_space<vmem>>, vector<1x128x256xf32>
    %6 = vector.shape_cast %5 : vector<1x128x256xf32> to vector<128x256xf32>
    %7 = vector.shape_cast %4 : vector<128x256xf32> to vector<1x128x256xf32>
    tpu.vector_store %arg4[%c0_4, %c0_5, %c0_6], %7 {strides = array<i32>} : memref<1x128x256xf32, #tpu.memory_space<vmem>>, vector<1x128x256xf32>,
    return
  }
  func.func @transform_0(%arg0: i32, %arg1: i32) -> (i32, i32) {
    %c0_i32 = arith.constant 0 : i32
    %c0_i32_0 = arith.constant 0 : i32
    %c0_i32_1 = arith.constant 0 : i32
    return %c0_i32, %c0_i32_0 : i32, i32
  }
  func.func @transform_1(%arg0: i32, %arg1: i32) -> (i32, i32, i32) {
    %c0_i32 = arith.constant 0 : i32
    %c0_i32_0 = arith.constant 0 : i32
    return %arg0, %c0_i32, %arg1 : i32, i32, i32
  }
  func.func @transform_2(%arg0: i32, %arg1: i32) -> (i32, i32, i32) {
    %c0_i32 = arith.constant 0 : i32
    %c0_i32_0 = arith.constant 0 : i32
    return %arg0, %c0_i32, %arg1 : i32, i32, i32
  }
}

</mosaic_0001>

<bundles_post_ra>
// kernel: conv2d_dilated.1
= control target key start
LH: loop header
LB: loop body
LE: loop exit
PB: predicated region body
PF: predicated region fallthrough
CT: control target
= control target key end

     0   :  { %s631_s9 = smov 0   ;;  %s633_s10 = smov 0   ;;  %s760_s0 = inlined_call_operand.vmem [shape: bf16[128,64], index: 0, kind: input, shape index: {}]   ;;  %s761_s1 = inlined_call_operand.vmem [shape: f32[2,64,256], index: 1, kind: input, shape index: {}]   ;;  %s762_s2 = inlined_call_operand.vmem [shape: f32[2,128,256], index: 2, kind: output, shape index: {}]  }
   0x1   :  { %s635_s11 = smov 0  }
   0x2 LB: > { %s24_s12 = sadd.s32 1, %s609_s10  ;;  %p525_p0 = scmp.ge.s32.totalorder %s613_s11, 1  ;;  %s613_s11 = sphi %s635_s11, %s12_s11   ;;  %s609_s10 = sphi %s633_s10, %s764_s10   ;;  %s605_s9 = sphi %s631_s9, %s763_s9  }
   0x3   : > { %p26_p1 = scmp.ge.s32.totalorder %s24_s12, 2  ;;  %p133_p2 = scmp.lt.s32.totalorder %s613_s11, 3 }
   0x5   : > { %s766_s12 = smov (%p26_p1, %s24_s12), 0  ;;  %p134_p3 = pnand %p525_p0, %p133_p2 }
   0x6   : > { %p164_p4 = scmp.lt.s32.totalorder (!%p134_p3), %s605_s9, 1  ;;  %v615_v0 = vmov (!%p134_p3), 0   ;;  %v583_v25 = vld [vmem:[%s760_s0] sm:$0xff] (!%p134_p3)   ;;  %vm264_vm0 = vcmask (!%p134_p3), 523264   ;;  %v585_v27 = vld [vmem:[%s760_s0 + $0x8] sm:$0xff] (!%p134_p3)   ;;  %v587_v29 = vld [vmem:[%s760_s0 + $0x10] sm:$0xff] (!%p134_p3)  }
   0x7   : > { %137 = sbr.rel (%p134_p3) target bundleno = 276 (0x114), region = 28  ;;  %321 = vmatprep.mubr.bf16.mxu0 (!%p134_p3), %v615_v0  ;;  %361 = vmatprep.mubr.bf16.mxu1 (!%p134_p3), %v615_v0  ;;  %v584_v26 = vld [vmem:[%s760_s0 + $0x20] sm:$0xff] (!%p134_p3)   ;;  %v586_v28 = vld [vmem:[%s760_s0 + $0x28] sm:$0xff] (!%p134_p3)   ;;  %v588_v30 = vld [vmem:[%s760_s0 + $0x30] sm:$0xff] (!%p134_p3)  }
   0x8   : > { %v589_v31 = vld [vmem:[%s760_s0 + $0x18] sm:$0xff] (!%p134_p3)  }
   0x9   : > { %v590_v32 = vld [vmem:[%s760_s0 + $0x38] sm:$0xff] (!%p134_p3)  }
   0xe   : > { %s768_s9 = smov (!%p164_p4, %s605_s9), 1 }
   0xf   : > { %s548_s13 = sshll.u32 %s768_s9, 7  ;;  %s549_s5 = sshll.u32 %s768_s9, 8 }
  0x10   : > { %s657_s16 = scalar_lea.vmem %s761_s1, %s548_s13  ;;  %s717_s8 = scalar_lea.vmem %s762_s2, %s549_s5 }
  0x11   : > { %v201_v1 = vld [vmem:[%s657_s16 + $0x8] sm:$0xff]  ;;  %v203_v2 = vld [vmem:[%s657_s16 + $0x18] sm:$0xff]  ;;  %v200_v3 = vld [vmem:[%s657_s16] sm:$0xff] }
  0x12   : > { %v217_v4 = vpack.c.bf16 %v203_v2, %v201_v1  ;;  %v202_v5 = vld [vmem:[%s657_s16 + $0x10] sm:$0xff]  ;;  %v205_v6 = vld [vmem:[%s657_s16 + $0x28] sm:$0xff]  ;;  %v207_v7 = vld [vmem:[%s657_s16 + $0x38] sm:$0xff] }
  0x13   : > { %v216_v8 = vpack.c.bf16 %v202_v5, %v200_v3  ;;  %v219_v9 = vpack.c.bf16 %v207_v7, %v205_v6  ;;  %v204_v10 = vld [vmem:[%s657_s16 + $0x20] sm:$0xff]  ;;  %v206_v11 = vld [vmem:[%s657_s16 + $0x30] sm:$0xff]  ;;  %v209_v12 = vld [vmem:[%s657_s16 + $0x48] sm:$0xff] }
  0x14   : > { %289 = vmatprep.subr.bf16.mxu0 %v217_v4  ;;  %550 = vmatprep.subr.bf16.mxu1 %v217_v4  ;;  %v211_v13 = vld [vmem:[%s657_s16 + $0x58] sm:$0xff]  ;;  %v218_v14 = vpack.c.bf16 %v206_v11, %v204_v10  ;;  %v208_v15 = vld [vmem:[%s657_s16 + $0x40] sm:$0xff]  ;;  %v210_v17 = vld [vmem:[%s657_s16 + $0x50] sm:$0xff] }
  0x15   : > { %290 = vmatpush1.bf16.msra.mxu0 %v216_v8  ;;  %554 = vmatpush1.bf16.msra.mxu1 %v216_v8  ;;  %v221_v16 = vpack.c.bf16 %v211_v13, %v209_v12  ;;  %v213_v18 = vld [vmem:[%s657_s16 + $0x68] sm:$0xff]  ;;  %v215_v19 = vld [vmem:[%s657_s16 + $0x78] sm:$0xff]  ;;  %v220_v20 = vpack.c.bf16 %v210_v17, %v208_v15  ;;  %v212_v22 = vld [vmem:[%s657_s16 + $0x60] sm:$0xff] }
  0x16   : > { %291 = vmatprep.subr.bf16.mxu0 %v219_v9  ;;  %551 = vmatprep.subr.bf16.mxu1 %v219_v9  ;;  %v223_v21 = vpack.c.bf16 %v215_v19, %v213_v18  ;;  %v214_v23 = vld [vmem:[%s657_s16 + $0x70] sm:$0xff] }
  0x17   : > { %v222_v24 = vpack.c.bf16 %v214_v23, %v212_v22 }
  0x19   : > { %292 = vmatpush1.bf16.msra.mxu0 %v218_v14  ;;  %555 = vmatpush1.bf16.msra.mxu1 %v218_v14 }
  0x1a   : > { %293 = vmatprep.subr.bf16.mxu0 %v221_v16  ;;  %552 = vmatprep.subr.bf16.mxu1 %v221_v16 }
  0x1d   : > { %294 = vmatpush1.bf16.msra.mxu0 %v220_v20  ;;  %556 = vmatpush1.bf16.msra.mxu1 %v220_v20 }
  0x1e   : > { %295 = vmatprep.subr.bf16.mxu0 %v223_v21  ;;  %553 = vmatprep.subr.bf16.mxu1 %v223_v21 }
  0x21   : > { %296 = vmatpush1.bf16.msra.mxu0 %v222_v24  ;;  %557 = vmatpush1.bf16.msra.mxu1 %v222_v24 }
  0x24   : > { %538 = vmatmul.mubr.msk.bf16.vlgmr.msra.gmra.mrb[0].mxu0 %vm264_vm0, %v583_v25  ;;  %542 = vmatmul.mubr.msk.bf16.vlgmr.msra.gmra.mrb[0].mxu1 %vm264_vm0, %v584_v26 }
  0x25   : > { %331 = vmatprep.mubr.bf16.mxu0 %v615_v0  ;;  %371 = vmatprep.mubr.bf16.mxu1 %v615_v0 }
  0x2c   : > { %539 = vmatmul.mubr.msk.bf16.gmra.mrb[4].mxu0 %vm264_vm0, %v585_v27  ;;  %543 = vmatmul.mubr.msk.bf16.gmra.mrb[4].mxu1 %vm264_vm0, %v586_v28 }
  0x2d   : > { %341 = vmatprep.mubr.bf16.mxu0 %v615_v0  ;;  %381 = vmatprep.mubr.bf16.mxu1 %v615_v0 }
  0x34   : > { %540 = vmatmul.mubr.msk.bf16.gmra.mrb[8].mxu0 %vm264_vm0, %v587_v29  ;;  %544 = vmatmul.mubr.msk.bf16.gmra.mrb[8].mxu1 %vm264_vm0, %v588_v30 }
  0x35   : > { %351 = vmatprep.mubr.bf16.mxu0 %v615_v0  ;;  %391 = vmatprep.mubr.bf16.mxu1 %v615_v0 }
  0x3c   : > { %541 = vmatmul.mubr.msk.bf16.gmra.mrb[12].mxu0 %vm264_vm0, %v589_v31  ;;  %545 = vmatmul.mubr.msk.bf16.gmra.mrb[12].mxu1 %vm264_vm0, %v590_v32 }
  0xf7   : > { %v323_v33 = vpop.f32.mrb[0].mxu0  ;;  %v363_v34 = vpop.f32.mrb[0].mxu1 }
  0xf8   : > { %402 = vst [vmem:[%s717_s8] sm:$0xff] %v323_v33  ;;  %418 = vst [vmem:[%s717_s8 + $0x80] sm:$0xff] %v363_v34  ;;  %v325_v35 = vpop.f32.mrb[1].mxu0  ;;  %v365_v36 = vpop.f32.mrb[1].mxu1 }
  0xf9   : > { %403 = vst [vmem:[%s717_s8 + $0x8] sm:$0xff] %v325_v35  ;;  %419 = vst [vmem:[%s717_s8 + $0x88] sm:$0xff] %v365_v36  ;;  %v327_v37 = vpop.f32.mrb[2].mxu0  ;;  %v367_v38 = vpop.f32.mrb[2].mxu1 }
  0xfa   : > { %404 = vst [vmem:[%s717_s8 + $0x10] sm:$0xff] %v327_v37  ;;  %420 = vst [vmem:[%s717_s8 + $0x90] sm:$0xff] %v367_v38  ;;  %v329_v39 = vpop.f32.mrb[3].mxu0  ;;  %v369_v40 = vpop.f32.mrb[3].mxu1 }
  0xfb   : > { %405 = vst [vmem:[%s717_s8 + $0x18] sm:$0xff] %v329_v39  ;;  %421 = vst [vmem:[%s717_s8 + $0x98] sm:$0xff] %v369_v40 }
  0xff   : > { %v333_v41 = vpop.f32.mrb[4].mxu0  ;;  %v373_v42 = vpop.f32.mrb[4].mxu1 }
 0x100   : > { %406 = vst [vmem:[%s717_s8 + $0x20] sm:$0xff] %v333_v41  ;;  %422 = vst [vmem:[%s717_s8 + $0xa0] sm:$0xff] %v373_v42  ;;  %v335_v43 = vpop.f32.mrb[5].mxu0  ;;  %v375_v44 = vpop.f32.mrb[5].mxu1 }
 0x101   : > { %407 = vst [vmem:[%s717_s8 + $0x28] sm:$0xff] %v335_v43  ;;  %423 = vst [vmem:[%s717_s8 + $0xa8] sm:$0xff] %v375_v44  ;;  %v337_v45 = vpop.f32.mrb[6].mxu0  ;;  %v377_v46 = vpop.f32.mrb[6].mxu1 }
 0x102   : > { %408 = vst [vmem:[%s717_s8 + $0x30] sm:$0xff] %v337_v45  ;;  %424 = vst [vmem:[%s717_s8 + $0xb0] sm:$0xff] %v377_v46  ;;  %v339_v47 = vpop.f32.mrb[7].mxu0  ;;  %v379_v48 = vpop.f32.mrb[7].mxu1 }
 0x103   : > { %409 = vst [vmem:[%s717_s8 + $0x38] sm:$0xff] %v339_v47  ;;  %425 = vst [vmem:[%s717_s8 + $0xb8] sm:$0xff] %v379_v48 }
 0x107   : > { %v343_v49 = vpop.f32.mrb[8].mxu0  ;;  %v383_v50 = vpop.f32.mrb[8].mxu1 }
 0x108   : > { %410 = vst [vmem:[%s717_s8 + $0x40] sm:$0xff] %v343_v49  ;;  %426 = vst [vmem:[%s717_s8 + $0xc0] sm:$0xff] %v383_v50  ;;  %v345_v51 = vpop.f32.mrb[9].mxu0  ;;  %v385_v52 = vpop.f32.mrb[9].mxu1 }
 0x109   : > { %411 = vst [vmem:[%s717_s8 + $0x48] sm:$0xff] %v345_v51  ;;  %427 = vst [vmem:[%s717_s8 + $0xc8] sm:$0xff] %v385_v52  ;;  %v347_v53 = vpop.f32.mrb[10].mxu0  ;;  %v387_v54 = vpop.f32.mrb[10].mxu1 }
 0x10a   : > { %412 = vst [vmem:[%s717_s8 + $0x50] sm:$0xff] %v347_v53  ;;  %428 = vst [vmem:[%s717_s8 + $0xd0] sm:$0xff] %v387_v54  ;;  %v349_v55 = vpop.f32.mrb[11].mxu0  ;;  %v389_v56 = vpop.f32.mrb[11].mxu1 }
 0x10b   : > { %413 = vst [vmem:[%s717_s8 + $0x58] sm:$0xff] %v349_v55  ;;  %429 = vst [vmem:[%s717_s8 + $0xd8] sm:$0xff] %v389_v56 }
 0x10f   : > { %v353_v57 = vpop.f32.mrb[12].mxu0  ;;  %v393_v58 = vpop.f32.mrb[12].mxu1 }
 0x110   : > { %414 = vst [vmem:[%s717_s8 + $0x60] sm:$0xff] %v353_v57  ;;  %430 = vst [vmem:[%s717_s8 + $0xe0] sm:$0xff] %v393_v58  ;;  %v355_v59 = vpop.f32.mrb[13].mxu0  ;;  %v395_v60 = vpop.f32.mrb[13].mxu1 }
 0x111   : > { %415 = vst [vmem:[%s717_s8 + $0x68] sm:$0xff] %v355_v59  ;;  %431 = vst [vmem:[%s717_s8 + $0xe8] sm:$0xff] %v395_v60  ;;  %v357_v61 = vpop.f32.mrb[14].mxu0  ;;  %v397_v62 = vpop.f32.mrb[14].mxu1 }
 0x112   : > { %416 = vst [vmem:[%s717_s8 + $0x70] sm:$0xff] %v357_v61  ;;  %432 = vst [vmem:[%s717_s8 + $0xf0] sm:$0xff] %v397_v62  ;;  %v359_v63 = vpop.f32.mrb[15].mxu0  ;;  %v399_v0 = vpop.f32.mrb[15].mxu1 }
 0x113   : > { %417 = vst [vmem:[%s717_s8 + $0x78] sm:$0xff] %v359_v63  ;;  %433 = vst [vmem:[%s717_s8 + $0xf8] sm:$0xff] %v399_v0 }
 0x114 PF: > { %s12_s11 = sadd.s32 1, %s613_s11   ;;  %s763_s9 = smov %s609_s10 }
 0x115   : > { %p9_p5 = scmp.ge.s32.totalorder %s12_s11, 4   ;;  %s764_s10 = smov %s766_s12 }
 0x117   :  { %11 = sbr.rel (!%p9_p5) target bundleno = 2 (0x2), region = 58 }

</bundles_post_ra>
